<compile_context>
chip_gen: v6e
topology: v6e:2x2x1
jax: 0.10.0
libtpu: 0.0.40
codegen_flags: <defaults>
</compile_context>

<pallas_src>
import jax
import jax.numpy as jnp
from jax.experimental import pallas as pl
from jax.experimental.pallas import tpu as pltpu


# ----------------------------- Pallas kernel -------------------------------- #

def _actor_mlp_kernel(x_ref,                       # (TB, F)
                      w1_ref, b1_ref,              # (F, Hp), (1, Hp)
                      w2_ref, b2_ref,              # (Hp, Hp), (1, Hp)
                      w3_ref, b3_ref,              # (Hp, Hp), (1, Hp)
                      w4_ref, b4_ref,              # (Hp, Hp), (1, Hp)
                      w5_ref, b5_ref,              # (Hp, Op), (1, Op)
                      out_ref):                    # (TB, Op)
    x = x_ref[...]

    h = jnp.dot(x, w1_ref[...], preferred_element_type=jnp.float32) + b1_ref[...]
    h = jnp.maximum(h, 0.0)

    h = jnp.dot(h, w2_ref[...], preferred_element_type=jnp.float32) + b2_ref[...]
    h = jnp.maximum(h, 0.0)

    h = jnp.dot(h, w3_ref[...], preferred_element_type=jnp.float32) + b3_ref[...]
    h = jnp.maximum(h, 0.0)

    h = jnp.dot(h, w4_ref[...], preferred_element_type=jnp.float32) + b4_ref[...]
    h = jnp.maximum(h, 0.0)

    y = jnp.dot(h, w5_ref[...], preferred_element_type=jnp.float32) + b5_ref[...]
    out_ref[...] = jax.nn.sigmoid(y)


# ------------------------------- helpers ------------------------------------ #

def _round_up(n, m):
    return ((n + m - 1) // m) * m


def _pad2d(x, rows, cols):
    r, c = x.shape
    if r == rows and c == cols:
        return x
    return jnp.pad(x, ((0, rows - r), (0, cols - c)))


def _choose_batch_tile(B):
    """Pick (TB, B_pad) with TB a multiple of 8 and B_pad an exact multiple of TB.

    TB is capped at 512 rows (amortizes grid-step overhead, feeds the MXU) and
    the tile count is >= 2 whenever B allows it, so the "parallel" batch axis
    can shard across v7x's two TensorCores.
    """
    TB_MAX = 512
    B8 = _round_up(max(B, 1), 8)
    if B8 <= 8:
        nt = 1
    else:
        nt = max(2, -(-B8 // TB_MAX))            # ceil, but at least 2 tiles
    TB = _round_up(-(-B8 // nt), 8)              # balanced tile, multiple of 8
    B_pad = _round_up(B8, TB)
    return TB, B_pad


# ------------------------------- wrapper ------------------------------------ #

def actor_nn_forward(state, params):
    """state: (B, input_size) float32.  Returns (B, output_size) float32."""
    B, F = state.shape
    H = params["w1"].shape[1]
    O = params["w5"].shape[1]

    # --- lane-pad hidden / output widths to 128 multiples -------------------
    H_pad = _round_up(H, 128)
    O_pad = _round_up(O, 128)

    w1 = _pad2d(params["w1"], F, H_pad)
    b1 = _pad2d(params["b1"], 1, H_pad)
    w2 = _pad2d(params["w2"], H_pad, H_pad)
    b2 = _pad2d(params["b2"], 1, H_pad)
    w3 = _pad2d(params["w3"], H_pad, H_pad)
    b3 = _pad2d(params["b3"], 1, H_pad)
    w4 = _pad2d(params["w4"], H_pad, H_pad)
    b4 = _pad2d(params["b4"], 1, H_pad)
    w5 = _pad2d(params["w5"], H_pad, O_pad)
    b5 = _pad2d(params["b5"], 1, O_pad)

    # --- batch tiling: B_pad is an exact multiple of TB (correctness fix) ---
    TB, B_pad = _choose_batch_tile(B)
    n_tiles = B_pad // TB
    state_p = state if B_pad == B else jnp.pad(state, ((0, B_pad - B), (0, 0)))

    # --- VMEM budget (headroom on top of actual footprint) ------------------
    w_bytes = 4 * (F * H_pad + 3 * H_pad * H_pad + H_pad * O_pad
                   + 4 * H_pad + O_pad)
    act_bytes = 4 * TB * (2 * F + 2 * O_pad + 4 * H_pad)
    try:
        vmem_cap = int(pltpu.get_tpu_info().vmem_capacity_bytes * 0.9)
    except Exception:
        vmem_cap = 64 * 1024 * 1024              # v7x per-core capacity floor
    vmem_limit = int(min(vmem_cap,
                         max(2 * (2 * w_bytes + act_bytes), 32 * 1024 * 1024)))
    # TODO(synk): if 2*w_bytes itself exceeds vmem_cap (H >~ 1500 f32 on v7x),
    # tile the HxH layers along K with an extra "arbitrary" grid axis instead
    # of keeping all weights VMEM-resident.

    cost = pl.CostEstimate(
        flops=2 * B_pad * (F * H_pad + 3 * H_pad * H_pad + H_pad * O_pad),
        transcendentals=B_pad * O_pad,
        bytes_accessed=w_bytes + 4 * B_pad * (F + O_pad),
    )

    compiler_params = pltpu.CompilerParams(
        dimension_semantics=("parallel",),
        vmem_limit_bytes=vmem_limit,
    )

    args = (state_p, w1, b1, w2, b2, w3, b3, w4, b4, w5, b5)

    def make_call(single_buffer_weights):
        def btile(shape):
            return pl.BlockSpec(shape, lambda i: (i, 0))

        if single_buffer_weights:
            def full(shape):
                # Constant block index across the grid -> single buffer
                # (halves resident-weight VMEM; double-buffering buys nothing).
                return pl.BlockSpec(shape, lambda i: (0, 0),
                                    pipeline_mode=pl.Buffered(1))
        else:
            def full(shape):
                return pl.BlockSpec(shape, lambda i: (0, 0))

        return pl.pallas_call(
            _actor_mlp_kernel,
            out_shape=jax.ShapeDtypeStruct((B_pad, O_pad), jnp.float32),
            grid=(n_tiles,),
            in_specs=[
                btile((TB, F)),
                full((F, H_pad)), full((1, H_pad)),
                full((H_pad, H_pad)), full((1, H_pad)),
                full((H_pad, H_pad)), full((1, H_pad)),
                full((H_pad, H_pad)), full((1, H_pad)),
                full((H_pad, O_pad)), full((1, O_pad)),
            ],
            out_specs=btile((TB, O_pad)),
            compiler_params=compiler_params,
            cost_estimate=cost,
        )

    try:
        out = make_call(True)(*args)
    except Exception:
        # Fallback for Pallas versions that reject Buffered(1) on pallas_call
        # BlockSpecs: default double-buffered pipeline (correct, more VMEM).
        out = make_call(False)(*args)

    return out[:B, :O]


# -------------------------- pure-JAX reference ------------------------------ #

def _ref_forward(state, params):
    h = jnp.maximum(state @ params["w1"] + params["b1"], 0.0)
    h = jnp.maximum(h @ params["w2"] + params["b2"], 0.0)
    h = jnp.maximum(h @ params["w3"] + params["b3"], 0.0)
    h = jnp.maximum(h @ params["w4"] + params["b4"], 0.0)
    y = h @ params["w5"] + params["b5"]
    return jax.nn.sigmoid(y)


# ------------------------------- params ------------------------------------- #

def init_params(key, input_size, hidden_size, output_size):
    keys = jax.random.split(key, 10)

    def u(kk, fan_in, shape):
        bound = 1.0 / jnp.sqrt(jnp.float32(fan_in))
        return jax.random.uniform(kk, shape, jnp.float32, -bound, bound)

    return {
        # weights stored pre-transposed: (in_features, out_features)
        "w1": u(keys[0], input_size, (input_size, hidden_size)),
        "b1": u(keys[1], input_size, (1, hidden_size)),
        "w2": u(keys[2], hidden_size, (hidden_size, hidden_size)),
        "b2": u(keys[3], hidden_size, (1, hidden_size)),
        "w3": u(keys[4], hidden_size, (hidden_size, hidden_size)),
        "b3": u(keys[5], hidden_size, (1, hidden_size)),
        "w4": u(keys[6], hidden_size, (hidden_size, hidden_size)),
        "b4": u(keys[7], hidden_size, (1, hidden_size)),
        "w5": u(keys[8], hidden_size, (hidden_size, output_size)),
        "b5": u(keys[9], hidden_size, (1, output_size)),
    }


# --------------------------------- main -------------------------------------- #

if __name__ == "__main__":
    B, input_size, hidden_size, output_size = 2, 4, 32, 4

    key = jax.random.PRNGKey(0)
    kx, kp = jax.random.split(key)
    state = jax.random.normal(kx, (B, input_size), jnp.float32)
    params = init_params(kp, input_size, hidden_size, output_size)

    out = actor_nn_forward(state, params)
    out = jax.block_until_ready(out)

    ref = _ref_forward(state, params)
    assert out.shape == (B, output_size), out.shape
    assert jnp.allclose(out, ref, atol=1e-5, rtol=1e-5), \
        float(jnp.max(jnp.abs(out - ref)))

    print("KERNEL_OK")
</pallas_src>

<mosaic_0001>
module attributes {stable_mosaic.version = 11 : i64} {
  func.func @_actor_mlp_kernel(%arg0: i32, %arg1: memref<8x4xf32, #tpu.memory_space<vmem>>, %arg2: memref<4x128xf32, #tpu.memory_space<vmem>>, %arg3: memref<1x128xf32, #tpu.memory_space<vmem>>, %arg4: memref<128x128xf32, #tpu.memory_space<vmem>>, %arg5: memref<1x128xf32, #tpu.memory_space<vmem>>, %arg6: memref<128x128xf32, #tpu.memory_space<vmem>>, %arg7: memref<1x128xf32, #tpu.memory_space<vmem>>, %arg8: memref<128x128xf32, #tpu.memory_space<vmem>>, %arg9: memref<1x128xf32, #tpu.memory_space<vmem>>, %arg10: memref<128x128xf32, #tpu.memory_space<vmem>>, %arg11: memref<1x128xf32, #tpu.memory_space<vmem>>, %arg12: memref<8x128xf32, #tpu.memory_space<vmem>>) attributes {dimension_semantics = [#tpu.dimension_semantics<parallel>], iteration_bounds = array<i64: 1>, scalar_prefetch = 0 : i64, scratch_operands = 0 : i64, tpu.core_type = #tpu.core_type<tc>, window_params = [{transform_indices = @transform_0, window_bounds = array<i64: 8, 4>}, {pipeline_mode = #tpu.pipeline_mode<synchronous>, transform_indices = @transform_1, window_bounds = array<i64: 4, 128>}, {pipeline_mode = #tpu.pipeline_mode<synchronous>, transform_indices = @transform_2, window_bounds = array<i64: 1, 128>}, {pipeline_mode = #tpu.pipeline_mode<synchronous>, transform_indices = @transform_3, window_bounds = array<i64: 128, 128>}, {pipeline_mode = #tpu.pipeline_mode<synchronous>, transform_indices = @transform_4, window_bounds = array<i64: 1, 128>}, {pipeline_mode = #tpu.pipeline_mode<synchronous>, transform_indices = @transform_5, window_bounds = array<i64: 128, 128>}, {pipeline_mode = #tpu.pipeline_mode<synchronous>, transform_indices = @transform_6, window_bounds = array<i64: 1, 128>}, {pipeline_mode = #tpu.pipeline_mode<synchronous>, transform_indices = @transform_7, window_bounds = array<i64: 128, 128>}, {pipeline_mode = #tpu.pipeline_mode<synchronous>, transform_indices = @transform_8, window_bounds = array<i64: 1, 128>}, {pipeline_mode = #tpu.pipeline_mode<synchronous>, transform_indices = @transform_9, window_bounds = array<i64: 128, 128>}, {pipeline_mode = #tpu.pipeline_mode<synchronous>, transform_indices = @transform_10, window_bounds = array<i64: 1, 128>}, {transform_indices = @transform_11, window_bounds = array<i64: 8, 128>}]} {
    %c0 = arith.constant 0 : index
    %c0_0 = arith.constant 0 : index
    %0 = vector.load %arg1[%c0, %c0_0] : memref<8x4xf32, #tpu.memory_space<vmem>>, vector<8x4xf32>
    %c0_1 = arith.constant 0 : index
    %c0_2 = arith.constant 0 : index
    %1 = vector.load %arg2[%c0_1, %c0_2] : memref<4x128xf32, #tpu.memory_space<vmem>>, vector<4x128xf32>
    %cst = arith.constant dense<0.000000e+00> : vector<8x128xf32>
    %2 = tpu.matmul %0, %1, %cst {dimension_numbers = #tpu.dot_dimension_numbers<[1], [0], [0], [1], [0, 0, 1, 1], [], []>} : vector<8x4xf32>, vector<4x128xf32>, vector<8x128xf32> -> vector<8x128xf32>
    %c0_3 = arith.constant 0 : index
    %c0_4 = arith.constant 0 : index
    %3 = vector.load %arg3[%c0_3, %c0_4] : memref<1x128xf32, #tpu.memory_space<vmem>>, vector<1x128xf32>
    %4 = vector.broadcast %3 : vector<1x128xf32> to vector<8x128xf32>
    %5 = arith.addf %2, %4 : vector<8x128xf32>
    %cst_5 = arith.constant 0.000000e+00 : f32
    %6 = vector.broadcast %cst_5 : f32 to vector<8x128xf32>
    %7 = arith.maximumf %5, %6 : vector<8x128xf32>
    %c0_6 = arith.constant 0 : index
    %c0_7 = arith.constant 0 : index
    %8 = vector.load %arg4[%c0_6, %c0_7] : memref<128x128xf32, #tpu.memory_space<vmem>>, vector<128x128xf32>
    %cst_8 = arith.constant dense<0.000000e+00> : vector<8x128xf32>
    %9 = tpu.matmul %7, %8, %cst_8 {dimension_numbers = #tpu.dot_dimension_numbers<[1], [0], [0], [1], [0, 0, 1, 1], [], []>} : vector<8x128xf32>, vector<128x128xf32>, vector<8x128xf32> -> vector<8x128xf32>
    %c0_9 = arith.constant 0 : index
    %c0_10 = arith.constant 0 : index
    %10 = vector.load %arg5[%c0_9, %c0_10] : memref<1x128xf32, #tpu.memory_space<vmem>>, vector<1x128xf32>
    %11 = vector.broadcast %10 : vector<1x128xf32> to vector<8x128xf32>
    %12 = arith.addf %9, %11 : vector<8x128xf32>
    %cst_11 = arith.constant 0.000000e+00 : f32
    %13 = vector.broadcast %cst_11 : f32 to vector<8x128xf32>
    %14 = arith.maximumf %12, %13 : vector<8x128xf32>
    %c0_12 = arith.constant 0 : index
    %c0_13 = arith.constant 0 : index
    %15 = vector.load %arg6[%c0_12, %c0_13] : memref<128x128xf32, #tpu.memory_space<vmem>>, vector<128x128xf32>
    %cst_14 = arith.constant dense<0.000000e+00> : vector<8x128xf32>
    %16 = tpu.matmul %14, %15, %cst_14 {dimension_numbers = #tpu.dot_dimension_numbers<[1], [0], [0], [1], [0, 0, 1, 1], [], []>} : vector<8x128xf32>, vector<128x128xf32>, vector<8x128xf32> -> vector<8x128xf32>
    %c0_15 = arith.constant 0 : index
    %c0_16 = arith.constant 0 : index
    %17 = vector.load %arg7[%c0_15, %c0_16] : memref<1x128xf32, #tpu.memory_space<vmem>>, vector<1x128xf32>
    %18 = vector.broadcast %17 : vector<1x128xf32> to vector<8x128xf32>
    %19 = arith.addf %16, %18 : vector<8x128xf32>
    %cst_17 = arith.constant 0.000000e+00 : f32
    %20 = vector.broadcast %cst_17 : f32 to vector<8x128xf32>
    %21 = arith.maximumf %19, %20 : vector<8x128xf32>
    %c0_18 = arith.constant 0 : index
    %c0_19 = arith.constant 0 : index
    %22 = vector.load %arg8[%c0_18, %c0_19] : memref<128x128xf32, #tpu.memory_space<vmem>>, vector<128x128xf32>
    %cst_20 = arith.constant dense<0.000000e+00> : vector<8x128xf32>
    %23 = tpu.matmul %21, %22, %cst_20 {dimension_numbers = #tpu.dot_dimension_numbers<[1], [0], [0], [1], [0, 0, 1, 1], [], []>} : vector<8x128xf32>, vector<128x128xf32>, vector<8x128xf32> -> vector<8x128xf32>
    %c0_21 = arith.constant 0 : index
    %c0_22 = arith.constant 0 : index
    %24 = vector.load %arg9[%c0_21, %c0_22] : memref<1x128xf32, #tpu.memory_space<vmem>>, vector<1x128xf32>
    %25 = vector.broadcast %24 : vector<1x128xf32> to vector<8x128xf32>
    %26 = arith.addf %23, %25 : vector<8x128xf32>
    %cst_23 = arith.constant 0.000000e+00 : f32
    %27 = vector.broadcast %cst_23 : f32 to vector<8x128xf32>
    %28 = arith.maximumf %26, %27 : vector<8x128xf32>
    %c0_24 = arith.constant 0 : index
    %c0_25 = arith.constant 0 : index
    %29 = vector.load %arg10[%c0_24, %c0_25] : memref<128x128xf32, #tpu.memory_space<vmem>>, vector<128x128xf32>
    %cst_26 = arith.constant dense<0.000000e+00> : vector<8x128xf32>
    %30 = tpu.matmul %28, %29, %cst_26 {dimension_numbers = #tpu.dot_dimension_numbers<[1], [0], [0], [1], [0, 0, 1, 1], [], []>} : vector<8x128xf32>, vector<128x128xf32>, vector<8x128xf32> -> vector<8x128xf32>
    %c0_27 = arith.constant 0 : index
    %c0_28 = arith.constant 0 : index
    %31 = vector.load %arg11[%c0_27, %c0_28] : memref<1x128xf32, #tpu.memory_space<vmem>>, vector<1x128xf32>
    %32 = vector.broadcast %31 : vector<1x128xf32> to vector<8x128xf32>
    %33 = arith.addf %30, %32 : vector<8x128xf32>
    %34 = arith.negf %33 : vector<8x128xf32>
    %35 = math.exp %34 : vector<8x128xf32>
    %cst_29 = arith.constant 1.000000e+00 : f32
    %36 = vector.broadcast %cst_29 : f32 to vector<8x128xf32>
    %37 = arith.addf %36, %35 : vector<8x128xf32>
    %38 = arith.divf %36, %37 : vector<8x128xf32>
    %c0_30 = arith.constant 0 : index
    %c0_31 = arith.constant 0 : index
    %39 = vector.load %arg12[%c0_30, %c0_31] : memref<8x128xf32, #tpu.memory_space<vmem>>, vector<8x128xf32>
    tpu.vector_store %arg12[%c0_30, %c0_31], %38 {strides = array<i32>} : memref<8x128xf32, #tpu.memory_space<vmem>>, vector<8x128xf32>,
    return
  }
  func.func @transform_0(%arg0: i32) -> (i32, i32) {
    %c0_i32 = arith.constant 0 : i32
    %c0_i32_0 = arith.constant 0 : i32
    return %arg0, %c0_i32 : i32, i32
  }
  func.func @transform_1(%arg0: i32) -> (i32, i32) {
    %c0_i32 = arith.constant 0 : i32
    %c0_i32_0 = arith.constant 0 : i32
    %c0_i32_1 = arith.constant 0 : i32
    return %c0_i32, %c0_i32_0 : i32, i32
  }
  func.func @transform_2(%arg0: i32) -> (i32, i32) {
    %c0_i32 = arith.constant 0 : i32
    %c0_i32_0 = arith.constant 0 : i32
    %c0_i32_1 = arith.constant 0 : i32
    return %c0_i32, %c0_i32_0 : i32, i32
  }
  func.func @transform_3(%arg0: i32) -> (i32, i32) {
    %c0_i32 = arith.constant 0 : i32
    %c0_i32_0 = arith.constant 0 : i32
    %c0_i32_1 = arith.constant 0 : i32
    return %c0_i32, %c0_i32_0 : i32, i32
  }
  func.func @transform_4(%arg0: i32) -> (i32, i32) {
    %c0_i32 = arith.constant 0 : i32
    %c0_i32_0 = arith.constant 0 : i32
    %c0_i32_1 = arith.constant 0 : i32
    return %c0_i32, %c0_i32_0 : i32, i32
  }
  func.func @transform_5(%arg0: i32) -> (i32, i32) {
    %c0_i32 = arith.constant 0 : i32
    %c0_i32_0 = arith.constant 0 : i32
    %c0_i32_1 = arith.constant 0 : i32
    return %c0_i32, %c0_i32_0 : i32, i32
  }
  func.func @transform_6(%arg0: i32) -> (i32, i32) {
    %c0_i32 = arith.constant 0 : i32
    %c0_i32_0 = arith.constant 0 : i32
    %c0_i32_1 = arith.constant 0 : i32
    return %c0_i32, %c0_i32_0 : i32, i32
  }
  func.func @transform_7(%arg0: i32) -> (i32, i32) {
    %c0_i32 = arith.constant 0 : i32
    %c0_i32_0 = arith.constant 0 : i32
    %c0_i32_1 = arith.constant 0 : i32
    return %c0_i32, %c0_i32_0 : i32, i32
  }
  func.func @transform_8(%arg0: i32) -> (i32, i32) {
    %c0_i32 = arith.constant 0 : i32
    %c0_i32_0 = arith.constant 0 : i32
    %c0_i32_1 = arith.constant 0 : i32
    return %c0_i32, %c0_i32_0 : i32, i32
  }
  func.func @transform_9(%arg0: i32) -> (i32, i32) {
    %c0_i32 = arith.constant 0 : i32
    %c0_i32_0 = arith.constant 0 : i32
    %c0_i32_1 = arith.constant 0 : i32
    return %c0_i32, %c0_i32_0 : i32, i32
  }
  func.func @transform_10(%arg0: i32) -> (i32, i32) {
    %c0_i32 = arith.constant 0 : i32
    %c0_i32_0 = arith.constant 0 : i32
    %c0_i32_1 = arith.constant 0 : i32
    return %c0_i32, %c0_i32_0 : i32, i32
  }
  func.func @transform_11(%arg0: i32) -> (i32, i32) {
    %c0_i32 = arith.constant 0 : i32
    %c0_i32_0 = arith.constant 0 : i32
    return %arg0, %c0_i32 : i32, i32
  }
}

module attributes {stable_mosaic.version = 11 : i64} {
  func.func @_actor_mlp_kernel(%arg0: i32, %arg1: memref<8x4xf32, #tpu.memory_space<vmem>>, %arg2: memref<4x128xf32, #tpu.memory_space<vmem>>, %arg3: memref<1x128xf32, #tpu.memory_space<vmem>>, %arg4: memref<128x128xf32, #tpu.memory_space<vmem>>, %arg5: memref<1x128xf32, #tpu.memory_space<vmem>>, %arg6: memref<128x128xf32, #tpu.memory_space<vmem>>, %arg7: memref<1x128xf32, #tpu.memory_space<vmem>>, %arg8: memref<128x128xf32, #tpu.memory_space<vmem>>, %arg9: memref<1x128xf32, #tpu.memory_space<vmem>>, %arg10: memref<128x128xf32, #tpu.memory_space<vmem>>, %arg11: memref<1x128xf32, #tpu.memory_space<vmem>>, %arg12: memref<8x128xf32, #tpu.memory_space<vmem>>) attributes {dimension_semantics = [#tpu.dimension_semantics<parallel>], iteration_bounds = array<i64: 1>, scalar_prefetch = 0 : i64, scratch_operands = 0 : i64, tpu.core_type = #tpu.core_type<tc>, window_params = [{transform_indices = @transform_0, window_bounds = array<i64: 8, 4>}, {pipeline_mode = #tpu.pipeline_mode<synchronous>, transform_indices = @transform_1, window_bounds = array<i64: 4, 128>}, {pipeline_mode = #tpu.pipeline_mode<synchronous>, transform_indices = @transform_2, window_bounds = array<i64: 1, 128>}, {pipeline_mode = #tpu.pipeline_mode<synchronous>, transform_indices = @transform_3, window_bounds = array<i64: 128, 128>}, {pipeline_mode = #tpu.pipeline_mode<synchronous>, transform_indices = @transform_4, window_bounds = array<i64: 1, 128>}, {pipeline_mode = #tpu.pipeline_mode<synchronous>, transform_indices = @transform_5, window_bounds = array<i64: 128, 128>}, {pipeline_mode = #tpu.pipeline_mode<synchronous>, transform_indices = @transform_6, window_bounds = array<i64: 1, 128>}, {pipeline_mode = #tpu.pipeline_mode<synchronous>, transform_indices = @transform_7, window_bounds = array<i64: 128, 128>}, {pipeline_mode = #tpu.pipeline_mode<synchronous>, transform_indices = @transform_8, window_bounds = array<i64: 1, 128>}, {pipeline_mode = #tpu.pipeline_mode<synchronous>, transform_indices = @transform_9, window_bounds = array<i64: 128, 128>}, {pipeline_mode = #tpu.pipeline_mode<synchronous>, transform_indices = @transform_10, window_bounds = array<i64: 1, 128>}, {transform_indices = @transform_11, window_bounds = array<i64: 8, 128>}]} {
    %c0 = arith.constant 0 : index
    %c0_0 = arith.constant 0 : index
    %0 = vector.load %arg1[%c0, %c0_0] : memref<8x4xf32, #tpu.memory_space<vmem>>, vector<8x4xf32>
    %c0_1 = arith.constant 0 : index
    %c0_2 = arith.constant 0 : index
    %1 = vector.load %arg2[%c0_1, %c0_2] : memref<4x128xf32, #tpu.memory_space<vmem>>, vector<4x128xf32>
    %cst = arith.constant dense<0.000000e+00> : vector<8x128xf32>
    %2 = tpu.matmul %0, %1, %cst {dimension_numbers = #tpu.dot_dimension_numbers<[1], [0], [0], [1], [0, 0, 1, 1], [], []>} : vector<8x4xf32>, vector<4x128xf32>, vector<8x128xf32> -> vector<8x128xf32>
    %c0_3 = arith.constant 0 : index
    %c0_4 = arith.constant 0 : index
    %3 = vector.load %arg3[%c0_3, %c0_4] : memref<1x128xf32, #tpu.memory_space<vmem>>, vector<1x128xf32>
    %4 = vector.broadcast %3 : vector<1x128xf32> to vector<8x128xf32>
    %5 = arith.addf %2, %4 : vector<8x128xf32>
    %cst_5 = arith.constant 0.000000e+00 : f32
    %6 = vector.broadcast %cst_5 : f32 to vector<8x128xf32>
    %7 = arith.maximumf %5, %6 : vector<8x128xf32>
    %c0_6 = arith.constant 0 : index
    %c0_7 = arith.constant 0 : index
    %8 = vector.load %arg4[%c0_6, %c0_7] : memref<128x128xf32, #tpu.memory_space<vmem>>, vector<128x128xf32>
    %cst_8 = arith.constant dense<0.000000e+00> : vector<8x128xf32>
    %9 = tpu.matmul %7, %8, %cst_8 {dimension_numbers = #tpu.dot_dimension_numbers<[1], [0], [0], [1], [0, 0, 1, 1], [], []>} : vector<8x128xf32>, vector<128x128xf32>, vector<8x128xf32> -> vector<8x128xf32>
    %c0_9 = arith.constant 0 : index
    %c0_10 = arith.constant 0 : index
    %10 = vector.load %arg5[%c0_9, %c0_10] : memref<1x128xf32, #tpu.memory_space<vmem>>, vector<1x128xf32>
    %11 = vector.broadcast %10 : vector<1x128xf32> to vector<8x128xf32>
    %12 = arith.addf %9, %11 : vector<8x128xf32>
    %cst_11 = arith.constant 0.000000e+00 : f32
    %13 = vector.broadcast %cst_11 : f32 to vector<8x128xf32>
    %14 = arith.maximumf %12, %13 : vector<8x128xf32>
    %c0_12 = arith.constant 0 : index
    %c0_13 = arith.constant 0 : index
    %15 = vector.load %arg6[%c0_12, %c0_13] : memref<128x128xf32, #tpu.memory_space<vmem>>, vector<128x128xf32>
    %cst_14 = arith.constant dense<0.000000e+00> : vector<8x128xf32>
    %16 = tpu.matmul %14, %15, %cst_14 {dimension_numbers = #tpu.dot_dimension_numbers<[1], [0], [0], [1], [0, 0, 1, 1], [], []>} : vector<8x128xf32>, vector<128x128xf32>, vector<8x128xf32> -> vector<8x128xf32>
    %c0_15 = arith.constant 0 : index
    %c0_16 = arith.constant 0 : index
    %17 = vector.load %arg7[%c0_15, %c0_16] : memref<1x128xf32, #tpu.memory_space<vmem>>, vector<1x128xf32>
    %18 = vector.broadcast %17 : vector<1x128xf32> to vector<8x128xf32>
    %19 = arith.addf %16, %18 : vector<8x128xf32>
    %cst_17 = arith.constant 0.000000e+00 : f32
    %20 = vector.broadcast %cst_17 : f32 to vector<8x128xf32>
    %21 = arith.maximumf %19, %20 : vector<8x128xf32>
    %c0_18 = arith.constant 0 : index
    %c0_19 = arith.constant 0 : index
    %22 = vector.load %arg8[%c0_18, %c0_19] : memref<128x128xf32, #tpu.memory_space<vmem>>, vector<128x128xf32>
    %cst_20 = arith.constant dense<0.000000e+00> : vector<8x128xf32>
    %23 = tpu.matmul %21, %22, %cst_20 {dimension_numbers = #tpu.dot_dimension_numbers<[1], [0], [0], [1], [0, 0, 1, 1], [], []>} : vector<8x128xf32>, vector<128x128xf32>, vector<8x128xf32> -> vector<8x128xf32>
    %c0_21 = arith.constant 0 : index
    %c0_22 = arith.constant 0 : index
    %24 = vector.load %arg9[%c0_21, %c0_22] : memref<1x128xf32, #tpu.memory_space<vmem>>, vector<1x128xf32>
    %25 = vector.broadcast %24 : vector<1x128xf32> to vector<8x128xf32>
    %26 = arith.addf %23, %25 : vector<8x128xf32>
    %cst_23 = arith.constant 0.000000e+00 : f32
    %27 = vector.broadcast %cst_23 : f32 to vector<8x128xf32>
    %28 = arith.maximumf %26, %27 : vector<8x128xf32>
    %c0_24 = arith.constant 0 : index
    %c0_25 = arith.constant 0 : index
    %29 = vector.load %arg10[%c0_24, %c0_25] : memref<128x128xf32, #tpu.memory_space<vmem>>, vector<128x128xf32>
    %cst_26 = arith.constant dense<0.000000e+00> : vector<8x128xf32>
    %30 = tpu.matmul %28, %29, %cst_26 {dimension_numbers = #tpu.dot_dimension_numbers<[1], [0], [0], [1], [0, 0, 1, 1], [], []>} : vector<8x128xf32>, vector<128x128xf32>, vector<8x128xf32> -> vector<8x128xf32>
    %c0_27 = arith.constant 0 : index
    %c0_28 = arith.constant 0 : index
    %31 = vector.load %arg11[%c0_27, %c0_28] : memref<1x128xf32, #tpu.memory_space<vmem>>, vector<1x128xf32>
    %32 = vector.broadcast %31 : vector<1x128xf32> to vector<8x128xf32>
    %33 = arith.addf %30, %32 : vector<8x128xf32>
    %34 = arith.negf %33 : vector<8x128xf32>
    %35 = math.exp %34 : vector<8x128xf32>
    %cst_29 = arith.constant 1.000000e+00 : f32
    %36 = vector.broadcast %cst_29 : f32 to vector<8x128xf32>
    %37 = arith.addf %36, %35 : vector<8x128xf32>
    %38 = arith.divf %36, %37 : vector<8x128xf32>
    %c0_30 = arith.constant 0 : index
    %c0_31 = arith.constant 0 : index
    %39 = vector.load %arg12[%c0_30, %c0_31] : memref<8x128xf32, #tpu.memory_space<vmem>>, vector<8x128xf32>
    tpu.vector_store %arg12[%c0_30, %c0_31], %38 {strides = array<i32>} : memref<8x128xf32, #tpu.memory_space<vmem>>, vector<8x128xf32>,
    return
  }
  func.func @transform_0(%arg0: i32) -> (i32, i32) {
    %c0_i32 = arith.constant 0 : i32
    %c0_i32_0 = arith.constant 0 : i32
    return %arg0, %c0_i32 : i32, i32
  }
  func.func @transform_1(%arg0: i32) -> (i32, i32) {
    %c0_i32 = arith.constant 0 : i32
    %c0_i32_0 = arith.constant 0 : i32
    %c0_i32_1 = arith.constant 0 : i32
    return %c0_i32, %c0_i32_0 : i32, i32
  }
  func.func @transform_2(%arg0: i32) -> (i32, i32) {
    %c0_i32 = arith.constant 0 : i32
    %c0_i32_0 = arith.constant 0 : i32
    %c0_i32_1 = arith.constant 0 : i32
    return %c0_i32, %c0_i32_0 : i32, i32
  }
  func.func @transform_3(%arg0: i32) -> (i32, i32) {
    %c0_i32 = arith.constant 0 : i32
    %c0_i32_0 = arith.constant 0 : i32
    %c0_i32_1 = arith.constant 0 : i32
    return %c0_i32, %c0_i32_0 : i32, i32
  }
  func.func @transform_4(%arg0: i32) -> (i32, i32) {
    %c0_i32 = arith.constant 0 : i32
    %c0_i32_0 = arith.constant 0 : i32
    %c0_i32_1 = arith.constant 0 : i32
    return %c0_i32, %c0_i32_0 : i32, i32
  }
  func.func @transform_5(%arg0: i32) -> (i32, i32) {
    %c0_i32 = arith.constant 0 : i32
    %c0_i32_0 = arith.constant 0 : i32
    %c0_i32_1 = arith.constant 0 : i32
    return %c0_i32, %c0_i32_0 : i32, i32
  }
  func.func @transform_6(%arg0: i32) -> (i32, i32) {
    %c0_i32 = arith.constant 0 : i32
    %c0_i32_0 = arith.constant 0 : i32
    %c0_i32_1 = arith.constant 0 : i32
    return %c0_i32, %c0_i32_0 : i32, i32
  }
  func.func @transform_7(%arg0: i32) -> (i32, i32) {
    %c0_i32 = arith.constant 0 : i32
    %c0_i32_0 = arith.constant 0 : i32
    %c0_i32_1 = arith.constant 0 : i32
    return %c0_i32, %c0_i32_0 : i32, i32
  }
  func.func @transform_8(%arg0: i32) -> (i32, i32) {
    %c0_i32 = arith.constant 0 : i32
    %c0_i32_0 = arith.constant 0 : i32
    %c0_i32_1 = arith.constant 0 : i32
    return %c0_i32, %c0_i32_0 : i32, i32
  }
  func.func @transform_9(%arg0: i32) -> (i32, i32) {
    %c0_i32 = arith.constant 0 : i32
    %c0_i32_0 = arith.constant 0 : i32
    %c0_i32_1 = arith.constant 0 : i32
    return %c0_i32, %c0_i32_0 : i32, i32
  }
  func.func @transform_10(%arg0: i32) -> (i32, i32) {
    %c0_i32 = arith.constant 0 : i32
    %c0_i32_0 = arith.constant 0 : i32
    %c0_i32_1 = arith.constant 0 : i32
    return %c0_i32, %c0_i32_0 : i32, i32
  }
  func.func @transform_11(%arg0: i32) -> (i32, i32) {
    %c0_i32 = arith.constant 0 : i32
    %c0_i32_0 = arith.constant 0 : i32
    return %arg0, %c0_i32 : i32, i32
  }
}

</mosaic_0001>

<bundles_post_ra>
// kernel: tpu_custom_call.1
= control target key start
LH: loop header
LB: loop body
LE: loop exit
PB: predicated region body
PF: predicated region fallthrough
CT: control target
= control target key end

     0   :  { %16 = vsyncpa [#allocation3], 0  ;;  %s1117_s0 = inlined_call_operand.vmem [shape: f32[8,4], index: 0, kind: input, shape index: {}]   ;;  %s1118_s1 = inlined_call_operand.vmem [shape: f32[4,128], index: 1, kind: input, shape index: {}]   ;;  %s1119_s2 = inlined_call_operand.vmem [shape: f32[1,128], index: 2, kind: input, shape index: {}]   ;;  %s1120_s3 = inlined_call_operand.hbm [shape: f32[128,128], index: 3, kind: input, shape index: {}]   ;;  %s1121_s4 = inlined_call_operand.vmem [shape: f32[1,128], index: 4, kind: input, shape index: {}]   ;;  %s1122_s5 = inlined_call_operand.hbm [shape: f32[128,128], index: 5, kind: input, shape index: {}]   ;;  %s1123_s6 = inlined_call_operand.vmem [shape: f32[1,128], index: 6, kind: input, shape index: {}]   ;;  %s1124_s7 = inlined_call_operand.hbm [shape: f32[128,128], index: 7, kind: input, shape index: {}]   ;;  %s1125_s8 = inlined_call_operand.vmem [shape: f32[1,128], index: 8, kind: input, shape index: {}]   ;;  %s1126_s9 = inlined_call_operand.hbm [shape: f32[128,128], index: 9, kind: input, shape index: {}]   ;;  %s1127_s10 = inlined_call_operand.vmem [shape: f32[1,128], index: 10, kind: input, shape index: {}]   ;;  %s1128_s11 = inlined_call_operand.hbm [shape: f32[8,128], index: 11, kind: output, shape index: {}]  }
   0x1   :  { %17 = vsyncpa [#allocation6], 0 }
   0x2   :  { %18 = vsyncpa [#allocation9], 0 }
   0x3   :  { %19 = vsyncpa [#allocation4], 0  ;;  %s925_s17 = smov [#allocation5]   ;;  %s926_s19 = smov [#allocation2]  }
   0x4   :  { %s45_s18 = sshll.u32 %s925_s17, 4  ;;  %s31_s20 = sshll.u32 %s926_s19, 4  ;;  %s46_s18 = int_to_ptr.vmem [resolvable:$true] %s45_s18  ;;  %s32_s20 = int_to_ptr.vmem [resolvable:$true] %s31_s20 }
   0x5   :  { %s825_s21 = scalar_lea.vmem %s46_s18, 2048  ;;  %p830_p1 = scmp.lt.s32.totalorder %s46_s18, %s46_s18 }
   0x6   :  { %p826_p0 = scmp.ne.s32.totalorder %s46_s18, %s825_s21  ;;  %p831_p2 = scmp.lt.s32.totalorder %s825_s21, %s825_s21 }
   0x8   :  { %p832_p3 = por %p831_p2, %p830_p1 }
   0xa   :  { %p833_p4 = pnand %p832_p3, %p826_p0 }
   0xc   :  { %836 = shalt.err (!%p833_p4)
}
   0xd   :  { %s927_s22 = smov 128   ;;  %s928_s23 = smov 8  }
   0xe   :  { %51 = dma.hbm_to_vmem [thread:$0]  %s1122_s5, 2048, %s46_s18, [#allocation6], %s927_s22, %s927_s22, %s928_s23  }
   0xf   :  { %s845_s26 = scalar_lea.vmem %s32_s20, 2048  ;;  %p850_p6 = scmp.lt.s32.totalorder %s32_s20, %s32_s20 }
  0x10   :  { %p846_p5 = scmp.ne.s32.totalorder %s32_s20, %s845_s26  ;;  %p851_p7 = scmp.lt.s32.totalorder %s845_s26, %s845_s26 }
  0x12   :  { %p852_p8 = por %p851_p7, %p850_p6 }
  0x14   :  { %p853_p9 = pnand %p852_p8, %p846_p5 }
  0x16   :  { %856 = shalt.err (!%p853_p9)
}
  0x17   :  { %37 = dma.hbm_to_vmem [thread:$0]  %s1120_s3, 2048, %s32_s20, [#allocation3], %s927_s22, %s927_s22, %s928_s23  }
  0x18   :  { %s929_s29 = smov [#allocation7]   ;;  %s930_s12 = smov [#allocation8]  }
  0x19   :  { %s59_s30 = sshll.u32 %s929_s29, 4  ;;  %s73_s13 = sshll.u32 %s930_s12, 4  ;;  %s60_s30 = int_to_ptr.vmem [resolvable:$true] %s59_s30  ;;  %s74_s13 = int_to_ptr.vmem [resolvable:$true] %s73_s13 }
  0x1a   :  { %s865_s5 = scalar_lea.vmem %s60_s30, 2048  ;;  %p870_p11 = scmp.lt.s32.totalorder %s60_s30, %s60_s30 }
  0x1b   :  { %p866_p10 = scmp.ne.s32.totalorder %s60_s30, %s865_s5  ;;  %p871_p12 = scmp.lt.s32.totalorder %s865_s5, %s865_s5 }
  0x1d   :  { %p872_p13 = por %p871_p12, %p870_p11 }
  0x1f   :  { %p873_p0 = pnand %p872_p13, %p866_p10 }
  0x21   :  { %876 = shalt.err (!%p873_p0)
}
  0x22   :  { %65 = dma.hbm_to_vmem [thread:$0]  %s1124_s7, 2048, %s60_s30, [#allocation6], %s927_s22, %s927_s22, %s928_s23  }
  0x23   :  { %s885_s3 = scalar_lea.vmem %s74_s13, 2048  ;;  %p890_p2 = scmp.lt.s32.totalorder %s74_s13, %s74_s13 }
  0x24   :  { %p886_p1 = scmp.ne.s32.totalorder %s74_s13, %s885_s3  ;;  %p891_p3 = scmp.lt.s32.totalorder %s885_s3, %s885_s3 }
  0x26   :  { %p892_p4 = por %p891_p3, %p890_p2 }
  0x28   :  { %p893_p5 = pnand %p892_p4, %p886_p1 }
  0x2a   :  { %896 = shalt.err (!%p893_p5)
}
  0x2b   :  { %79 = dma.hbm_to_vmem [thread:$0]  %s1126_s9, 2048, %s74_s13, [#allocation9], %s927_s22, %s927_s22, %s928_s23  }
  0x2c   :  { %917 = dma.done.wait [#allocation3], 2048  }
  0x2d   :  { %918 = vsyncadd [#allocation3], 4294965248 }
  0x2e   :  { %919 = dma.done.wait [#allocation6], 4096  }
  0x2f   :  { %920 = vsyncadd [#allocation6], 4294963200 }
  0x30   :  { %921 = dma.done.wait [#allocation9], 2048  }
  0x31   :  { %922 = vsyncadd [#allocation9], 4294965248  ;;  %v931_v0 = vmov 0.0   ;;  %vm932_vm0 = vmmov 0   ;;  %vm107_vm1 = vcmask 1043456   ;;  %vm103_vm2 = vcmask 31744  }
  0x32   :  { %659 = vmatprep.subr.mxu0 %v931_v0  ;;  %661 = vmatprep.mubr.msk.f32.mxu0 %vm932_vm0, %v931_v0  ;;  %v95_v1 = vld [vmem:[%s1118_s1] sm:$0xf]  ;;  %v197_v3 = vld [vmem:[#allocation2 + $0x78] sm:$0xff]  ;;  %v196_v4 = vld [vmem:[#allocation2 + $0x70] sm:$0xff]  ;;  %s933_s25 = smov [#allocation10]  }
  0x33   :  { %664 = vmatprep.subr.mxu1 %v931_v0  ;;  %696 = vmatprep.mubr.msk.f32.mxu1 %vm932_vm0, %v931_v0  ;;  %v94_v2 = vld [vmem:[%s1117_s0] sm:$0xff]  ;;  %v195_v5 = vld [vmem:[#allocation2 + $0x68] sm:$0xff]  ;;  %v193_v7 = vld [vmem:[#allocation2 + $0x58] sm:$0xff]  ;;  %s570_s26 = sshll.u32 %s933_s25, 4  ;;  %s571_s26 = int_to_ptr.vmem [resolvable:$true] %s570_s26 }
  0x34   :  { %660 = vmatpush3.msk.msra.mxu0 %vm107_vm1, %v95_v1  ;;  %665 = vmatpush3.msra.mxu1 %v197_v3  ;;  %v194_v6 = vld [vmem:[#allocation2 + $0x60] sm:$0xff]  ;;  %v192_v8 = vld [vmem:[#allocation2 + $0x50] sm:$0xff]  ;;  %v191_v9 = vld [vmem:[#allocation2 + $0x48] sm:$0xff]  ;;  %p902_p7 = scmp.lt.s32.totalorder %s571_s26, %s571_s26 }
  0x35   :  { %662 = vmatmul.mubr.msk.f32.vlgmr.msra.gmra.mxu0 %vm103_vm2, %v94_v2  ;;  %666 = vmatprep.subr.mxu1 %v931_v0  ;;  %v190_v10 = vld [vmem:[#allocation2 + $0x40] sm:$0xff]  ;;  %v189_v11 = vld [vmem:[#allocation2 + $0x38] sm:$0xff]  ;;  %v188_v12 = vld [vmem:[#allocation2 + $0x30] sm:$0xff] }
  0x36   :  { %667 = vmatpush3.msra.mxu1 %v196_v4  ;;  %699 = vmatprep.subr.mxu0 %v931_v0  ;;  %v187_v13 = vld [vmem:[#allocation2 + $0x28] sm:$0xff]  ;;  %v186_v14 = vld [vmem:[#allocation2 + $0x20] sm:$0xff]  ;;  %v185_v15 = vld [vmem:[#allocation2 + $0x18] sm:$0xff] }
  0x37   :  { %668 = vmatprep.subr.mxu1 %v931_v0  ;;  %731 = vmatprep.mubr.msk.f32.mxu0 %vm932_vm0, %v931_v0  ;;  %v184_v16 = vld [vmem:[#allocation2 + $0x10] sm:$0xff]  ;;  %v183_v17 = vld [vmem:[#allocation2 + $0x8] sm:$0xff]  ;;  %v182_v18 = vld [vmem:[#allocation2] sm:$0xff] }
  0x38   :  { %669 = vmatpush3.msra.mxu1 %v195_v5  ;;  %v291_v19 = vld [vmem:[#allocation5 + $0x78] sm:$0xff]  ;;  %v290_v20 = vld [vmem:[#allocation5 + $0x70] sm:$0xff]  ;;  %v289_v21 = vld [vmem:[#allocation5 + $0x68] sm:$0xff] }
  0x39   :  { %670 = vmatprep.subr.mxu1 %v931_v0  ;;  %700 = vmatpush3.msra.mxu0 %v291_v19  ;;  %v288_v22 = vld [vmem:[#allocation5 + $0x60] sm:$0xff]  ;;  %v287_v23 = vld [vmem:[#allocation5 + $0x58] sm:$0xff]  ;;  %v286_v24 = vld [vmem:[#allocation5 + $0x50] sm:$0xff] }
  0x3a   :  { %671 = vmatpush3.msra.mxu1 %v194_v6  ;;  %701 = vmatprep.subr.mxu0 %v931_v0  ;;  %v285_v25 = vld [vmem:[#allocation5 + $0x48] sm:$0xff]  ;;  %v284_v26 = vld [vmem:[#allocation5 + $0x40] sm:$0xff]  ;;  %v283_v27 = vld [vmem:[#allocation5 + $0x38] sm:$0xff] }
  0x3b   :  { %672 = vmatprep.subr.mxu1 %v931_v0  ;;  %702 = vmatpush3.msra.mxu0 %v290_v20  ;;  %v282_v28 = vld [vmem:[#allocation5 + $0x30] sm:$0xff]  ;;  %v281_v29 = vld [vmem:[#allocation5 + $0x28] sm:$0xff]  ;;  %v280_v30 = vld [vmem:[#allocation5 + $0x20] sm:$0xff] }
  0x3c   :  { %673 = vmatpush3.msra.mxu1 %v193_v7  ;;  %703 = vmatprep.subr.mxu0 %v931_v0  ;;  %v279_v31 = vld [vmem:[#allocation5 + $0x18] sm:$0xff]  ;;  %v581_v32 = vld [vmem:[%s1119_s2] ss:$0 sm:$0xff]  ;;  %v278_v37 = vld [vmem:[#allocation5 + $0x10] sm:$0xff] }
  0x3d   :  { %674 = vmatprep.subr.mxu1 %v931_v0  ;;  %704 = vmatpush3.msra.mxu0 %v289_v21  ;;  %v277_v38 = vld [vmem:[#allocation5 + $0x8] sm:$0xff]  ;;  %v276_v39 = vld [vmem:[#allocation5] sm:$0xff]  ;;  %v385_v40 = vld [vmem:[#allocation7 + $0x78] sm:$0xff] }
  0x3e   :  { %675 = vmatpush3.msra.mxu1 %v192_v8  ;;  %705 = vmatprep.subr.mxu0 %v931_v0  ;;  %v384_v41 = vld [vmem:[#allocation7 + $0x70] sm:$0xff]  ;;  %v383_v42 = vld [vmem:[#allocation7 + $0x68] sm:$0xff]  ;;  %v382_v43 = vld [vmem:[#allocation7 + $0x60] sm:$0xff] }
  0x3f   :  { %676 = vmatprep.subr.mxu1 %v931_v0  ;;  %706 = vmatpush3.msra.mxu0 %v288_v22  ;;  %v381_v44 = vld [vmem:[#allocation7 + $0x58] sm:$0xff]  ;;  %v380_v45 = vld [vmem:[#allocation7 + $0x50] sm:$0xff]  ;;  %v379_v46 = vld [vmem:[#allocation7 + $0x48] sm:$0xff] }
  0x40   :  { %677 = vmatpush3.msra.mxu1 %v191_v9  ;;  %707 = vmatprep.subr.mxu0 %v931_v0  ;;  %v378_v47 = vld [vmem:[#allocation7 + $0x40] sm:$0xff]  ;;  %v377_v48 = vld [vmem:[#allocation7 + $0x38] sm:$0xff]  ;;  %v376_v49 = vld [vmem:[#allocation7 + $0x30] sm:$0xff] }
  0x41   :  { %678 = vmatprep.subr.mxu1 %v931_v0  ;;  %708 = vmatpush3.msra.mxu0 %v287_v23  ;;  %v375_v50 = vld [vmem:[#allocation7 + $0x28] sm:$0xff]  ;;  %v374_v51 = vld [vmem:[#allocation7 + $0x20] sm:$0xff]  ;;  %v373_v52 = vld [vmem:[#allocation7 + $0x18] sm:$0xff] }
  0x42   :  { %679 = vmatpush3.msra.mxu1 %v190_v10  ;;  %709 = vmatprep.subr.mxu0 %v931_v0  ;;  %v584_v53 = vld [vmem:[%s1121_s4] ss:$0 sm:$0xff]  ;;  %v372_v58 = vld [vmem:[#allocation7 + $0x10] sm:$0xff]  ;;  %v371_v59 = vld [vmem:[#allocation7 + $0x8] sm:$0xff] }
  0x43   :  { %680 = vmatprep.subr.mxu1 %v931_v0  ;;  %710 = vmatpush3.msra.mxu0 %v286_v24  ;;  %v370_v60 = vld [vmem:[#allocation7] sm:$0xff]  ;;  %v479_v61 = vld [vmem:[#allocation8 + $0x78] sm:$0xff]  ;;  %v478_v62 = vld [vmem:[#allocation8 + $0x70] sm:$0xff] }
  0x44   :  { %681 = vmatpush3.msra.mxu1 %v189_v11  ;;  %711 = vmatprep.subr.mxu0 %v931_v0  ;;  %v477_v63 = vld [vmem:[#allocation8 + $0x68] sm:$0xff]  ;;  %v476_v1 = vld [vmem:[#allocation8 + $0x60] sm:$0xff]  ;;  %v475_v2 = vld [vmem:[#allocation8 + $0x58] sm:$0xff] }
  0x45   :  { %682 = vmatprep.subr.mxu1 %v931_v0  ;;  %712 = vmatpush3.msra.mxu0 %v285_v25  ;;  %v474_v3 = vld [vmem:[#allocation8 + $0x50] sm:$0xff]  ;;  %v473_v4 = vld [vmem:[#allocation8 + $0x48] sm:$0xff]  ;;  %v472_v5 = vld [vmem:[#allocation8 + $0x40] sm:$0xff] }
  0x46   :  { %683 = vmatpush3.msra.mxu1 %v188_v12  ;;  %713 = vmatprep.subr.mxu0 %v931_v0  ;;  %v471_v6 = vld [vmem:[#allocation8 + $0x38] sm:$0xff]  ;;  %v470_v7 = vld [vmem:[#allocation8 + $0x30] sm:$0xff]  ;;  %v469_v8 = vld [vmem:[#allocation8 + $0x28] sm:$0xff] }
  0x47   :  { %684 = vmatprep.subr.mxu1 %v931_v0  ;;  %714 = vmatpush3.msra.mxu0 %v284_v26  ;;  %v468_v9 = vld [vmem:[#allocation8 + $0x20] sm:$0xff]  ;;  %v467_v10 = vld [vmem:[#allocation8 + $0x18] sm:$0xff] }
  0x48   :  { %685 = vmatpush3.msra.mxu1 %v187_v13  ;;  %715 = vmatprep.subr.mxu0 %v931_v0  ;;  %v585_v11 = vld [vmem:[%s1123_s6] ss:$0 sm:$0xff] }
  0x49   :  { %686 = vmatprep.subr.mxu1 %v931_v0  ;;  %716 = vmatpush3.msra.mxu0 %v283_v27  ;;  %v586_v19 = vld [vmem:[%s1125_s8] ss:$0 sm:$0xff]  ;;  %s897_s8 = scalar_lea.vmem %s571_s26, 128 }
  0x4a   :  { %687 = vmatpush3.msra.mxu1 %v186_v14  ;;  %717 = vmatprep.subr.mxu0 %v931_v0  ;;  %v587_v24 = vld [vmem:[%s1127_s10] ss:$0 sm:$0xff]  ;;  %p898_p6 = scmp.ne.s32.totalorder %s571_s26, %s897_s8  ;;  %p903_p8 = scmp.lt.s32.totalorder %s897_s8, %s897_s8 }
  0x4b   :  { %688 = vmatprep.subr.mxu1 %v931_v0  ;;  %718 = vmatpush3.msra.mxu0 %v282_v28 }
  0x4c   :  { %689 = vmatpush3.msra.mxu1 %v185_v15  ;;  %719 = vmatprep.subr.mxu0 %v931_v0  ;;  %p904_p9 = por %p903_p8, %p902_p7 }
  0x4d   :  { %690 = vmatprep.subr.mxu1 %v931_v0  ;;  %720 = vmatpush3.msra.mxu0 %v281_v29 }
  0x4e   :  { %691 = vmatpush3.msra.mxu1 %v184_v16  ;;  %721 = vmatprep.subr.mxu0 %v931_v0  ;;  %v466_v16 = vld [vmem:[#allocation8 + $0x10] sm:$0xff]  ;;  %p905_p10 = pnand %p904_p9, %p898_p6 }
  0x4f   :  { %692 = vmatprep.subr.mxu1 %v931_v0  ;;  %722 = vmatpush3.msra.mxu0 %v280_v30 }
  0x50   :  { %693 = vmatpush3.msra.mxu1 %v183_v17  ;;  %723 = vmatprep.subr.mxu0 %v931_v0  ;;  %v465_v17 = vld [vmem:[#allocation8 + $0x8] sm:$0xff] }
  0x51   :  { %694 = vmatprep.subr.mxu1 %v931_v0  ;;  %724 = vmatpush3.msra.mxu0 %v279_v31 }
  0x52   :  { %695 = vmatpush3.msra.mxu1 %v182_v18  ;;  %725 = vmatprep.subr.mxu0 %v931_v0  ;;  %v464_v18 = vld [vmem:[#allocation8] sm:$0xff] }
  0x53   :  { %734 = vmatprep.subr.mxu1 %v931_v0  ;;  %726 = vmatpush3.msra.mxu0 %v278_v37 }
  0x54   :  { %727 = vmatprep.subr.mxu0 %v931_v0 }
  0x55   :  { %728 = vmatpush3.msra.mxu0 %v277_v38 }
  0x56   :  { %729 = vmatprep.subr.mxu0 %v931_v0 }
  0x57   :  { %730 = vmatpush3.msra.mxu0 %v276_v39 }
  0x58   :  { %769 = vmatprep.subr.mxu0 %v931_v0 }
  0xf5   :  { %v177_v33 = vpop.f32.mrf.mxu0 }
  0xf6   :  { %v178_v34 = vadd.f32 %v581_v32, %v177_v33 }
  0xf7   :  { %v663_v35 = vpop.f32.mrf.mxu0 }
  0xf8   :  { %v181_v36 = vmax.f32 %v178_v34, 0.0 }
  0xfa   :  { %697 = vmatmul.mubr.f32.vlgmr.msra.gmra.mxu1 %v181_v36 }
  0xfb   :  { %766 = vmatprep.mubr.msk.f32.mxu1 %vm932_vm0, %v931_v0  ;;  %735 = vmatpush3.msra.mxu1 %v385_v40 }
  0xfc   :  { %736 = vmatprep.subr.mxu1 %v931_v0 }
  0xfd   :  { %737 = vmatpush3.msra.mxu1 %v384_v41 }
  0xfe   :  { %738 = vmatprep.subr.mxu1 %v931_v0 }
  0xff   :  { %739 = vmatpush3.msra.mxu1 %v383_v42 }
 0x100   :  { %740 = vmatprep.subr.mxu1 %v931_v0 }
 0x101   :  { %741 = vmatpush3.msra.mxu1 %v382_v43 }
 0x102   :  { %742 = vmatprep.subr.mxu1 %v931_v0 }
 0x103   :  { %743 = vmatpush3.msra.mxu1 %v381_v44 }
 0x104   :  { %744 = vmatprep.subr.mxu1 %v931_v0 }
 0x105   :  { %745 = vmatpush3.msra.mxu1 %v380_v45 }
 0x106   :  { %746 = vmatprep.subr.mxu1 %v931_v0 }
 0x107   :  { %747 = vmatpush3.msra.mxu1 %v379_v46 }
 0x108   :  { %748 = vmatprep.subr.mxu1 %v931_v0 }
 0x109   :  { %749 = vmatpush3.msra.mxu1 %v378_v47 }
 0x10a   :  { %750 = vmatprep.subr.mxu1 %v931_v0 }
 0x10b   :  { %751 = vmatpush3.msra.mxu1 %v377_v48 }
 0x10c   :  { %752 = vmatprep.subr.mxu1 %v931_v0 }
 0x10d   :  { %753 = vmatpush3.msra.mxu1 %v376_v49 }
 0x10e   :  { %754 = vmatprep.subr.mxu1 %v931_v0 }
 0x10f   :  { %755 = vmatpush3.msra.mxu1 %v375_v50 }
 0x110   :  { %756 = vmatprep.subr.mxu1 %v931_v0 }
 0x111   :  { %757 = vmatpush3.msra.mxu1 %v374_v51 }
 0x112   :  { %758 = vmatprep.subr.mxu1 %v931_v0 }
 0x113   :  { %759 = vmatpush3.msra.mxu1 %v373_v52 }
 0x114   :  { %760 = vmatprep.subr.mxu1 %v931_v0 }
 0x115   :  { %761 = vmatpush3.msra.mxu1 %v372_v58 }
 0x116   :  { %762 = vmatprep.subr.mxu1 %v931_v0 }
 0x117   :  { %763 = vmatpush3.msra.mxu1 %v371_v59 }
 0x118   :  { %764 = vmatprep.subr.mxu1 %v931_v0 }
 0x119   :  { %765 = vmatpush3.msra.mxu1 %v370_v60 }
 0x1ba   :  { %v271_v54 = vpop.f32.mrf.mxu1 }
 0x1bb   :  { %v272_v55 = vadd.f32 %v584_v53, %v271_v54 }
 0x1bc   :  { %v698_v56 = vpop.f32.mrf.mxu1 }
 0x1bd   :  { %v275_v57 = vmax.f32 %v272_v55, 0.0 }
 0x1bf   :  { %732 = vmatmul.mubr.f32.vlgmr.msra.gmra.mxu0 %v275_v57 }
 0x1c0   :  { %801 = vmatprep.mubr.msk.f32.mxu0 %vm932_vm0, %v931_v0  ;;  %770 = vmatpush3.msra.mxu0 %v479_v61 }
 0x1c1   :  { %771 = vmatprep.subr.mxu0 %v931_v0 }
 0x1c2   :  { %772 = vmatpush3.msra.mxu0 %v478_v62 }
 0x1c3   :  { %773 = vmatprep.subr.mxu0 %v931_v0 }
 0x1c4   :  { %774 = vmatpush3.msra.mxu0 %v477_v63 }
 0x1c5   :  { %775 = vmatprep.subr.mxu0 %v931_v0 }
 0x1c6   :  { %776 = vmatpush3.msra.mxu0 %v476_v1 }
 0x1c7   :  { %777 = vmatprep.subr.mxu0 %v931_v0 }
 0x1c8   :  { %778 = vmatpush3.msra.mxu0 %v475_v2 }
 0x1c9   :  { %779 = vmatprep.subr.mxu0 %v931_v0 }
 0x1ca   :  { %780 = vmatpush3.msra.mxu0 %v474_v3 }
 0x1cb   :  { %781 = vmatprep.subr.mxu0 %v931_v0 }
 0x1cc   :  { %782 = vmatpush3.msra.mxu0 %v473_v4 }
 0x1cd   :  { %783 = vmatprep.subr.mxu0 %v931_v0 }
 0x1ce   :  { %784 = vmatpush3.msra.mxu0 %v472_v5 }
 0x1cf   :  { %785 = vmatprep.subr.mxu0 %v931_v0 }
 0x1d0   :  { %786 = vmatpush3.msra.mxu0 %v471_v6 }
 0x1d1   :  { %787 = vmatprep.subr.mxu0 %v931_v0 }
 0x1d2   :  { %788 = vmatpush3.msra.mxu0 %v470_v7 }
 0x1d3   :  { %789 = vmatprep.subr.mxu0 %v931_v0 }
 0x1d4   :  { %790 = vmatpush3.msra.mxu0 %v469_v8 }
 0x1d5   :  { %791 = vmatprep.subr.mxu0 %v931_v0 }
 0x1d6   :  { %792 = vmatpush3.msra.mxu0 %v468_v9 }
 0x1d7   :  { %793 = vmatprep.subr.mxu0 %v931_v0 }
 0x1d8   :  { %794 = vmatpush3.msra.mxu0 %v467_v10 }
 0x1d9   :  { %795 = vmatprep.subr.mxu0 %v931_v0 }
 0x1da   :  { %796 = vmatpush3.msra.mxu0 %v466_v16 }
 0x1db   :  { %797 = vmatprep.subr.mxu0 %v931_v0 }
 0x1dc   :  { %798 = vmatpush3.msra.mxu0 %v465_v17 }
 0x1dd   :  { %799 = vmatprep.subr.mxu0 %v931_v0 }
 0x1de   :  { %800 = vmatpush3.msra.mxu0 %v464_v18 }
 0x27f   :  { %v365_v12 = vpop.f32.mrf.mxu0 }
 0x280   :  { %v366_v13 = vadd.f32 %v585_v11, %v365_v12 }
 0x281   :  { %v733_v14 = vpop.f32.mrf.mxu0 }
 0x282   :  { %v369_v15 = vmax.f32 %v366_v13, 0.0 }
 0x284   :  { %767 = vmatmul.mubr.f32.vlgmr.msra.gmra.mxu1 %v369_v15 }
 0x344   :  { %v459_v20 = vpop.f32.mrf.mxu1 }
 0x345   :  { %v460_v21 = vadd.f32 %v586_v19, %v459_v20 }
 0x346   :  { %v768_v22 = vpop.f32.mrf.mxu1 }
 0x347   :  { %v463_v23 = vmax.f32 %v460_v21, 0.0 }
 0x349   :  { %802 = vmatmul.mubr.f32.vlgmr.msra.gmra.mxu0 %v463_v23 }
 0x409   :  { %v553_v25 = vpop.f32.mrf.mxu0 }
 0x40a   :  { %v554_v26 = vadd.f32 %v587_v24, %v553_v25 }
 0x40b   :  { %v803_v27 = vpop.f32.mrf.mxu0 }
 0x40c   :  { %v588_v28 = vmul.f32 -1.442695, %v554_v26 }
 0x40e   :  { %813 = vpow2.f32 %v588_v28 }
 0x41b   :  { %v814_v0 = vpop.eup %813 }
 0x41c   :  { %v560_v29 = vadd.f32 1.0, %v814_v0 }
 0x41e   :  { %815 = vrcp.f32 %v560_v29 }
 0x42b   :  { %v816_v30 = vpop.eup %815 }
 0x42c   :  { %563 = vst [vmem:[#allocation10] sm:$0xff] %v816_v30 }
 0x42d   :  { %908 = shalt.err (!%p905_p10)
}
 0x42e   :  { %573 = dma.vmem_to_hbm [thread:$0]  %s571_s26, 128, %s1128_s11, [#allocation4]  }
 0x42f   :  { %923 = dma.done.wait [#allocation4], 128  }
 0x430   :  { %924 = vsyncadd [#allocation4], 4294967168 }
 0x431   :  { %577 = vsyncpa [#allocation3], 1 }
 0x432   :  { %578 = vsyncpa [#allocation6], 1 }
 0x433   :  { %579 = vsyncpa [#allocation9], 1 }
 0x434   :  { %580 = vsyncpa [#allocation4], 1 }

// kernel: tpu_custom_call.1
= control target key start
LH: loop header
LB: loop body
LE: loop exit
PB: predicated region body
PF: predicated region fallthrough
CT: control target
= control target key end

     0   :  { %16 = vsyncpa [#allocation3], 0  ;;  %s1117_s0 = inlined_call_operand.vmem [shape: f32[8,4], index: 0, kind: input, shape index: {}]   ;;  %s1118_s1 = inlined_call_operand.vmem [shape: f32[4,128], index: 1, kind: input, shape index: {}]   ;;  %s1119_s2 = inlined_call_operand.vmem [shape: f32[1,128], index: 2, kind: input, shape index: {}]   ;;  %s1120_s3 = inlined_call_operand.hbm [shape: f32[128,128], index: 3, kind: input, shape index: {}]   ;;  %s1121_s4 = inlined_call_operand.vmem [shape: f32[1,128], index: 4, kind: input, shape index: {}]   ;;  %s1122_s5 = inlined_call_operand.hbm [shape: f32[128,128], index: 5, kind: input, shape index: {}]   ;;  %s1123_s6 = inlined_call_operand.vmem [shape: f32[1,128], index: 6, kind: input, shape index: {}]   ;;  %s1124_s7 = inlined_call_operand.hbm [shape: f32[128,128], index: 7, kind: input, shape index: {}]   ;;  %s1125_s8 = inlined_call_operand.vmem [shape: f32[1,128], index: 8, kind: input, shape index: {}]   ;;  %s1126_s9 = inlined_call_operand.hbm [shape: f32[128,128], index: 9, kind: input, shape index: {}]   ;;  %s1127_s10 = inlined_call_operand.vmem [shape: f32[1,128], index: 10, kind: input, shape index: {}]   ;;  %s1128_s11 = inlined_call_operand.hbm [shape: f32[8,128], index: 11, kind: output, shape index: {}]  }
   0x1   :  { %17 = vsyncpa [#allocation6], 0 }
   0x2   :  { %18 = vsyncpa [#allocation9], 0 }
   0x3   :  { %19 = vsyncpa [#allocation4], 0  ;;  %s925_s17 = smov [#allocation5]   ;;  %s926_s19 = smov [#allocation2]  }
   0x4   :  { %s45_s18 = sshll.u32 %s925_s17, 4  ;;  %s31_s20 = sshll.u32 %s926_s19, 4  ;;  %s46_s18 = int_to_ptr.vmem [resolvable:$true] %s45_s18  ;;  %s32_s20 = int_to_ptr.vmem [resolvable:$true] %s31_s20 }
   0x5   :  { %s825_s21 = scalar_lea.vmem %s46_s18, 2048  ;;  %p830_p1 = scmp.lt.s32.totalorder %s46_s18, %s46_s18 }
   0x6   :  { %p826_p0 = scmp.ne.s32.totalorder %s46_s18, %s825_s21  ;;  %p831_p2 = scmp.lt.s32.totalorder %s825_s21, %s825_s21 }
   0x8   :  { %p832_p3 = por %p831_p2, %p830_p1 }
   0xa   :  { %p833_p4 = pnand %p832_p3, %p826_p0 }
   0xc   :  { %836 = shalt.err (!%p833_p4)
}
   0xd   :  { %s927_s22 = smov 128   ;;  %s928_s23 = smov 8  }
   0xe   :  { %51 = dma.hbm_to_vmem [thread:$0]  %s1122_s5, 2048, %s46_s18, [#allocation6], %s927_s22, %s927_s22, %s928_s23  }
   0xf   :  { %s845_s26 = scalar_lea.vmem %s32_s20, 2048  ;;  %p850_p6 = scmp.lt.s32.totalorder %s32_s20, %s32_s20 }
  0x10   :  { %p846_p5 = scmp.ne.s32.totalorder %s32_s20, %s845_s26  ;;  %p851_p7 = scmp.lt.s32.totalorder %s845_s26, %s845_s26 }
  0x12   :  { %p852_p8 = por %p851_p7, %p850_p6 }
  0x14   :  { %p853_p9 = pnand %p852_p8, %p846_p5 }
  0x16   :  { %856 = shalt.err (!%p853_p9)
}
  0x17   :  { %37 = dma.hbm_to_vmem [thread:$0]  %s1120_s3, 2048, %s32_s20, [#allocation3], %s927_s22, %s927_s22, %s928_s23  }
  0x18   :  { %s929_s29 = smov [#allocation7]   ;;  %s930_s12 = smov [#allocation8]  }
  0x19   :  { %s59_s30 = sshll.u32 %s929_s29, 4  ;;  %s73_s13 = sshll.u32 %s930_s12, 4  ;;  %s60_s30 = int_to_ptr.vmem [resolvable:$true] %s59_s30  ;;  %s74_s13 = int_to_ptr.vmem [resolvable:$true] %s73_s13 }
  0x1a   :  { %s865_s5 = scalar_lea.vmem %s60_s30, 2048  ;;  %p870_p11 = scmp.lt.s32.totalorder %s60_s30, %s60_s30 }
  0x1b   :  { %p866_p10 = scmp.ne.s32.totalorder %s60_s30, %s865_s5  ;;  %p871_p12 = scmp.lt.s32.totalorder %s865_s5, %s865_s5 }
  0x1d   :  { %p872_p13 = por %p871_p12, %p870_p11 }
  0x1f   :  { %p873_p0 = pnand %p872_p13, %p866_p10 }
  0x21   :  { %876 = shalt.err (!%p873_p0)
}
  0x22   :  { %65 = dma.hbm_to_vmem [thread:$0]  %s1124_s7, 2048, %s60_s30, [#allocation6], %s927_s22, %s927_s22, %s928_s23  }
  0x23   :  { %s885_s3 = scalar_lea.vmem %s74_s13, 2048  ;;  %p890_p2 = scmp.lt.s32.totalorder %s74_s13, %s74_s13 }
  0x24   :  { %p886_p1 = scmp.ne.s32.totalorder %s74_s13, %s885_s3  ;;  %p891_p3 = scmp.lt.s32.totalorder %s885_s3, %s885_s3 }
  0x26   :  { %p892_p4 = por %p891_p3, %p890_p2 }
  0x28   :  { %p893_p5 = pnand %p892_p4, %p886_p1 }
  0x2a   :  { %896 = shalt.err (!%p893_p5)
}
  0x2b   :  { %79 = dma.hbm_to_vmem [thread:$0]  %s1126_s9, 2048, %s74_s13, [#allocation9], %s927_s22, %s927_s22, %s928_s23  }
  0x2c   :  { %917 = dma.done.wait [#allocation3], 2048  }
  0x2d   :  { %918 = vsyncadd [#allocation3], 4294965248 }
  0x2e   :  { %919 = dma.done.wait [#allocation6], 4096  }
  0x2f   :  { %920 = vsyncadd [#allocation6], 4294963200 }
  0x30   :  { %921 = dma.done.wait [#allocation9], 2048  }
  0x31   :  { %922 = vsyncadd [#allocation9], 4294965248  ;;  %v931_v0 = vmov 0.0   ;;  %vm932_vm0 = vmmov 0   ;;  %vm107_vm1 = vcmask 1043456   ;;  %vm103_vm2 = vcmask 31744  }
  0x32   :  { %659 = vmatprep.subr.mxu0 %v931_v0  ;;  %661 = vmatprep.mubr.msk.f32.mxu0 %vm932_vm0, %v931_v0  ;;  %v95_v1 = vld [vmem:[%s1118_s1] sm:$0xf]  ;;  %v197_v3 = vld [vmem:[#allocation2 + $0x78] sm:$0xff]  ;;  %v196_v4 = vld [vmem:[#allocation2 + $0x70] sm:$0xff]  ;;  %s933_s25 = smov [#allocation10]  }
  0x33   :  { %664 = vmatprep.subr.mxu1 %v931_v0  ;;  %696 = vmatprep.mubr.msk.f32.mxu1 %vm932_vm0, %v931_v0  ;;  %v94_v2 = vld [vmem:[%s1117_s0] sm:$0xff]  ;;  %v195_v5 = vld [vmem:[#allocation2 + $0x68] sm:$0xff]  ;;  %v193_v7 = vld [vmem:[#allocation2 + $0x58] sm:$0xff]  ;;  %s570_s26 = sshll.u32 %s933_s25, 4  ;;  %s571_s26 = int_to_ptr.vmem [resolvable:$true] %s570_s26 }
  0x34   :  { %660 = vmatpush3.msk.msra.mxu0 %vm107_vm1, %v95_v1  ;;  %665 = vmatpush3.msra.mxu1 %v197_v3  ;;  %v194_v6 = vld [vmem:[#allocation2 + $0x60] sm:$0xff]  ;;  %v192_v8 = vld [vmem:[#allocation2 + $0x50] sm:$0xff]  ;;  %v191_v9 = vld [vmem:[#allocation2 + $0x48] sm:$0xff]  ;;  %p902_p7 = scmp.lt.s32.totalorder %s571_s26, %s571_s26 }
  0x35   :  { %662 = vmatmul.mubr.msk.f32.vlgmr.msra.gmra.mxu0 %vm103_vm2, %v94_v2  ;;  %666 = vmatprep.subr.mxu1 %v931_v0  ;;  %v190_v10 = vld [vmem:[#allocation2 + $0x40] sm:$0xff]  ;;  %v189_v11 = vld [vmem:[#allocation2 + $0x38] sm:$0xff]  ;;  %v188_v12 = vld [vmem:[#allocation2 + $0x30] sm:$0xff] }
  0x36   :  { %667 = vmatpush3.msra.mxu1 %v196_v4  ;;  %699 = vmatprep.subr.mxu0 %v931_v0  ;;  %v187_v13 = vld [vmem:[#allocation2 + $0x28] sm:$0xff]  ;;  %v186_v14 = vld [vmem:[#allocation2 + $0x20] sm:$0xff]  ;;  %v185_v15 = vld [vmem:[#allocation2 + $0x18] sm:$0xff] }
  0x37   :  { %668 = vmatprep.subr.mxu1 %v931_v0  ;;  %731 = vmatprep.mubr.msk.f32.mxu0 %vm932_vm0, %v931_v0  ;;  %v184_v16 = vld [vmem:[#allocation2 + $0x10] sm:$0xff]  ;;  %v183_v17 = vld [vmem:[#allocation2 + $0x8] sm:$0xff]  ;;  %v182_v18 = vld [vmem:[#allocation2] sm:$0xff] }
  0x38   :  { %669 = vmatpush3.msra.mxu1 %v195_v5  ;;  %v291_v19 = vld [vmem:[#allocation5 + $0x78] sm:$0xff]  ;;  %v290_v20 = vld [vmem:[#allocation5 + $0x70] sm:$0xff]  ;;  %v289_v21 = vld [vmem:[#allocation5 + $0x68] sm:$0xff] }
  0x39   :  { %670 = vmatprep.subr.mxu1 %v931_v0  ;;  %700 = vmatpush3.msra.mxu0 %v291_v19  ;;  %v288_v22 = vld [vmem:[#allocation5 + $0x60] sm:$0xff]  ;;  %v287_v23 = vld [vmem:[#allocation5 + $0x58] sm:$0xff]  ;;  %v286_v24 = vld [vmem:[#allocation5 + $0x50] sm:$0xff] }
  0x3a   :  { %671 = vmatpush3.msra.mxu1 %v194_v6  ;;  %701 = vmatprep.subr.mxu0 %v931_v0  ;;  %v285_v25 = vld [vmem:[#allocation5 + $0x48] sm:$0xff]  ;;  %v284_v26 = vld [vmem:[#allocation5 + $0x40] sm:$0xff]  ;;  %v283_v27 = vld [vmem:[#allocation5 + $0x38] sm:$0xff] }
  0x3b   :  { %672 = vmatprep.subr.mxu1 %v931_v0  ;;  %702 = vmatpush3.msra.mxu0 %v290_v20  ;;  %v282_v28 = vld [vmem:[#allocation5 + $0x30] sm:$0xff]  ;;  %v281_v29 = vld [vmem:[#allocation5 + $0x28] sm:$0xff]  ;;  %v280_v30 = vld [vmem:[#allocation5 + $0x20] sm:$0xff] }
  0x3c   :  { %673 = vmatpush3.msra.mxu1 %v193_v7  ;;  %703 = vmatprep.subr.mxu0 %v931_v0  ;;  %v279_v31 = vld [vmem:[#allocation5 + $0x18] sm:$0xff]  ;;  %v581_v32 = vld [vmem:[%s1119_s2] ss:$0 sm:$0xff]  ;;  %v278_v37 = vld [vmem:[#allocation5 + $0x10] sm:$0xff] }
  0x3d   :  { %674 = vmatprep.subr.mxu1 %v931_v0  ;;  %704 = vmatpush3.msra.mxu0 %v289_v21  ;;  %v277_v38 = vld [vmem:[#allocation5 + $0x8] sm:$0xff]  ;;  %v276_v39 = vld [vmem:[#allocation5] sm:$0xff]  ;;  %v385_v40 = vld [vmem:[#allocation7 + $0x78] sm:$0xff] }
  0x3e   :  { %675 = vmatpush3.msra.mxu1 %v192_v8  ;;  %705 = vmatprep.subr.mxu0 %v931_v0  ;;  %v384_v41 = vld [vmem:[#allocation7 + $0x70] sm:$0xff]  ;;  %v383_v42 = vld [vmem:[#allocation7 + $0x68] sm:$0xff]  ;;  %v382_v43 = vld [vmem:[#allocation7 + $0x60] sm:$0xff] }
  0x3f   :  { %676 = vmatprep.subr.mxu1 %v931_v0  ;;  %706 = vmatpush3.msra.mxu0 %v288_v22  ;;  %v381_v44 = vld [vmem:[#allocation7 + $0x58] sm:$0xff]  ;;  %v380_v45 = vld [vmem:[#allocation7 + $0x50] sm:$0xff]  ;;  %v379_v46 = vld [vmem:[#allocation7 + $0x48] sm:$0xff] }
  0x40   :  { %677 = vmatpush3.msra.mxu1 %v191_v9  ;;  %707 = vmatprep.subr.mxu0 %v931_v0  ;;  %v378_v47 = vld [vmem:[#allocation7 + $0x40] sm:$0xff]  ;;  %v377_v48 = vld [vmem:[#allocation7 + $0x38] sm:$0xff]  ;;  %v376_v49 = vld [vmem:[#allocation7 + $0x30] sm:$0xff] }
  0x41   :  { %678 = vmatprep.subr.mxu1 %v931_v0  ;;  %708 = vmatpush3.msra.mxu0 %v287_v23  ;;  %v375_v50 = vld [vmem:[#allocation7 + $0x28] sm:$0xff]  ;;  %v374_v51 = vld [vmem:[#allocation7 + $0x20] sm:$0xff]  ;;  %v373_v52 = vld [vmem:[#allocation7 + $0x18] sm:$0xff] }
  0x42   :  { %679 = vmatpush3.msra.mxu1 %v190_v10  ;;  %709 = vmatprep.subr.mxu0 %v931_v0  ;;  %v584_v53 = vld [vmem:[%s1121_s4] ss:$0 sm:$0xff]  ;;  %v372_v58 = vld [vmem:[#allocation7 + $0x10] sm:$0xff]  ;;  %v371_v59 = vld [vmem:[#allocation7 + $0x8] sm:$0xff] }
  0x43   :  { %680 = vmatprep.subr.mxu1 %v931_v0  ;;  %710 = vmatpush3.msra.mxu0 %v286_v24  ;;  %v370_v60 = vld [vmem:[#allocation7] sm:$0xff]  ;;  %v479_v61 = vld [vmem:[#allocation8 + $0x78] sm:$0xff]  ;;  %v478_v62 = vld [vmem:[#allocation8 + $0x70] sm:$0xff] }
  0x44   :  { %681 = vmatpush3.msra.mxu1 %v189_v11  ;;  %711 = vmatprep.subr.mxu0 %v931_v0  ;;  %v477_v63 = vld [vmem:[#allocation8 + $0x68] sm:$0xff]  ;;  %v476_v1 = vld [vmem:[#allocation8 + $0x60] sm:$0xff]  ;;  %v475_v2 = vld [vmem:[#allocation8 + $0x58] sm:$0xff] }
  0x45   :  { %682 = vmatprep.subr.mxu1 %v931_v0  ;;  %712 = vmatpush3.msra.mxu0 %v285_v25  ;;  %v474_v3 = vld [vmem:[#allocation8 + $0x50] sm:$0xff]  ;;  %v473_v4 = vld [vmem:[#allocation8 + $0x48] sm:$0xff]  ;;  %v472_v5 = vld [vmem:[#allocation8 + $0x40] sm:$0xff] }
  0x46   :  { %683 = vmatpush3.msra.mxu1 %v188_v12  ;;  %713 = vmatprep.subr.mxu0 %v931_v0  ;;  %v471_v6 = vld [vmem:[#allocation8 + $0x38] sm:$0xff]  ;;  %v470_v7 = vld [vmem:[#allocation8 + $0x30] sm:$0xff]  ;;  %v469_v8 = vld [vmem:[#allocation8 + $0x28] sm:$0xff] }
  0x47   :  { %684 = vmatprep.subr.mxu1 %v931_v0  ;;  %714 = vmatpush3.msra.mxu0 %v284_v26  ;;  %v468_v9 = vld [vmem:[#allocation8 + $0x20] sm:$0xff]  ;;  %v467_v10 = vld [vmem:[#allocation8 + $0x18] sm:$0xff] }
  0x48   :  { %685 = vmatpush3.msra.mxu1 %v187_v13  ;;  %715 = vmatprep.subr.mxu0 %v931_v0  ;;  %v585_v11 = vld [vmem:[%s1123_s6] ss:$0 sm:$0xff] }
  0x49   :  { %686 = vmatprep.subr.mxu1 %v931_v0  ;;  %716 = vmatpush3.msra.mxu0 %v283_v27  ;;  %v586_v19 = vld [vmem:[%s1125_s8] ss:$0 sm:$0xff]  ;;  %s897_s8 = scalar_lea.vmem %s571_s26, 128 }
  0x4a   :  { %687 = vmatpush3.msra.mxu1 %v186_v14  ;;  %717 = vmatprep.subr.mxu0 %v931_v0  ;;  %v587_v24 = vld [vmem:[%s1127_s10] ss:$0 sm:$0xff]  ;;  %p898_p6 = scmp.ne.s32.totalorder %s571_s26, %s897_s8  ;;  %p903_p8 = scmp.lt.s32.totalorder %s897_s8, %s897_s8 }
  0x4b   :  { %688 = vmatprep.subr.mxu1 %v931_v0  ;;  %718 = vmatpush3.msra.mxu0 %v282_v28 }
  0x4c   :  { %689 = vmatpush3.msra.mxu1 %v185_v15  ;;  %719 = vmatprep.subr.mxu0 %v931_v0  ;;  %p904_p9 = por %p903_p8, %p902_p7 }
  0x4d   :  { %690 = vmatprep.subr.mxu1 %v931_v0  ;;  %720 = vmatpush3.msra.mxu0 %v281_v29 }
  0x4e   :  { %691 = vmatpush3.msra.mxu1 %v184_v16  ;;  %721 = vmatprep.subr.mxu0 %v931_v0  ;;  %v466_v16 = vld [vmem:[#allocation8 + $0x10] sm:$0xff]  ;;  %p905_p10 = pnand %p904_p9, %p898_p6 }
  0x4f   :  { %692 = vmatprep.subr.mxu1 %v931_v0  ;;  %722 = vmatpush3.msra.mxu0 %v280_v30 }
  0x50   :  { %693 = vmatpush3.msra.mxu1 %v183_v17  ;;  %723 = vmatprep.subr.mxu0 %v931_v0  ;;  %v465_v17 = vld [vmem:[#allocation8 + $0x8] sm:$0xff] }
  0x51   :  { %694 = vmatprep.subr.mxu1 %v931_v0  ;;  %724 = vmatpush3.msra.mxu0 %v279_v31 }
  0x52   :  { %695 = vmatpush3.msra.mxu1 %v182_v18  ;;  %725 = vmatprep.subr.mxu0 %v931_v0  ;;  %v464_v18 = vld [vmem:[#allocation8] sm:$0xff] }
  0x53   :  { %734 = vmatprep.subr.mxu1 %v931_v0  ;;  %726 = vmatpush3.msra.mxu0 %v278_v37 }
  0x54   :  { %727 = vmatprep.subr.mxu0 %v931_v0 }
  0x55   :  { %728 = vmatpush3.msra.mxu0 %v277_v38 }
  0x56   :  { %729 = vmatprep.subr.mxu0 %v931_v0 }
  0x57   :  { %730 = vmatpush3.msra.mxu0 %v276_v39 }
  0x58   :  { %769 = vmatprep.subr.mxu0 %v931_v0 }
  0xf5   :  { %v177_v33 = vpop.f32.mrf.mxu0 }
  0xf6   :  { %v178_v34 = vadd.f32 %v581_v32, %v177_v33 }
  0xf7   :  { %v663_v35 = vpop.f32.mrf.mxu0 }
  0xf8   :  { %v181_v36 = vmax.f32 %v178_v34, 0.0 }
  0xfa   :  { %697 = vmatmul.mubr.f32.vlgmr.msra.gmra.mxu1 %v181_v36 }
  0xfb   :  { %766 = vmatprep.mubr.msk.f32.mxu1 %vm932_vm0, %v931_v0  ;;  %735 = vmatpush3.msra.mxu1 %v385_v40 }
  0xfc   :  { %736 = vmatprep.subr.mxu1 %v931_v0 }
  0xfd   :  { %737 = vmatpush3.msra.mxu1 %v384_v41 }
  0xfe   :  { %738 = vmatprep.subr.mxu1 %v931_v0 }
  0xff   :  { %739 = vmatpush3.msra.mxu1 %v383_v42 }
 0x100   :  { %740 = vmatprep.subr.mxu1 %v931_v0 }
 0x101   :  { %741 = vmatpush3.msra.mxu1 %v382_v43 }
 0x102   :  { %742 = vmatprep.subr.mxu1 %v931_v0 }
 0x103   :  { %743 = vmatpush3.msra.mxu1 %v381_v44 }
 0x104   :  { %744 = vmatprep.subr.mxu1 %v931_v0 }
 0x105   :  { %745 = vmatpush3.msra.mxu1 %v380_v45 }
 0x106   :  { %746 = vmatprep.subr.mxu1 %v931_v0 }
 0x107   :  { %747 = vmatpush3.msra.mxu1 %v379_v46 }
 0x108   :  { %748 = vmatprep.subr.mxu1 %v931_v0 }
 0x109   :  { %749 = vmatpush3.msra.mxu1 %v378_v47 }
 0x10a   :  { %750 = vmatprep.subr.mxu1 %v931_v0 }
 0x10b   :  { %751 = vmatpush3.msra.mxu1 %v377_v48 }
 0x10c   :  { %752 = vmatprep.subr.mxu1 %v931_v0 }
 0x10d   :  { %753 = vmatpush3.msra.mxu1 %v376_v49 }
 0x10e   :  { %754 = vmatprep.subr.mxu1 %v931_v0 }
 0x10f   :  { %755 = vmatpush3.msra.mxu1 %v375_v50 }
 0x110   :  { %756 = vmatprep.subr.mxu1 %v931_v0 }
 0x111   :  { %757 = vmatpush3.msra.mxu1 %v374_v51 }
 0x112   :  { %758 = vmatprep.subr.mxu1 %v931_v0 }
 0x113   :  { %759 = vmatpush3.msra.mxu1 %v373_v52 }
 0x114   :  { %760 = vmatprep.subr.mxu1 %v931_v0 }
 0x115   :  { %761 = vmatpush3.msra.mxu1 %v372_v58 }
 0x116   :  { %762 = vmatprep.subr.mxu1 %v931_v0 }
 0x117   :  { %763 = vmatpush3.msra.mxu1 %v371_v59 }
 0x118   :  { %764 = vmatprep.subr.mxu1 %v931_v0 }
 0x119   :  { %765 = vmatpush3.msra.mxu1 %v370_v60 }
 0x1ba   :  { %v271_v54 = vpop.f32.mrf.mxu1 }
 0x1bb   :  { %v272_v55 = vadd.f32 %v584_v53, %v271_v54 }
 0x1bc   :  { %v698_v56 = vpop.f32.mrf.mxu1 }
 0x1bd   :  { %v275_v57 = vmax.f32 %v272_v55, 0.0 }
 0x1bf   :  { %732 = vmatmul.mubr.f32.vlgmr.msra.gmra.mxu0 %v275_v57 }
 0x1c0   :  { %801 = vmatprep.mubr.msk.f32.mxu0 %vm932_vm0, %v931_v0  ;;  %770 = vmatpush3.msra.mxu0 %v479_v61 }
 0x1c1   :  { %771 = vmatprep.subr.mxu0 %v931_v0 }
 0x1c2   :  { %772 = vmatpush3.msra.mxu0 %v478_v62 }
 0x1c3   :  { %773 = vmatprep.subr.mxu0 %v931_v0 }
 0x1c4   :  { %774 = vmatpush3.msra.mxu0 %v477_v63 }
 0x1c5   :  { %775 = vmatprep.subr.mxu0 %v931_v0 }
 0x1c6   :  { %776 = vmatpush3.msra.mxu0 %v476_v1 }
 0x1c7   :  { %777 = vmatprep.subr.mxu0 %v931_v0 }
 0x1c8   :  { %778 = vmatpush3.msra.mxu0 %v475_v2 }
 0x1c9   :  { %779 = vmatprep.subr.mxu0 %v931_v0 }
 0x1ca   :  { %780 = vmatpush3.msra.mxu0 %v474_v3 }
 0x1cb   :  { %781 = vmatprep.subr.mxu0 %v931_v0 }
 0x1cc   :  { %782 = vmatpush3.msra.mxu0 %v473_v4 }
 0x1cd   :  { %783 = vmatprep.subr.mxu0 %v931_v0 }
 0x1ce   :  { %784 = vmatpush3.msra.mxu0 %v472_v5 }
 0x1cf   :  { %785 = vmatprep.subr.mxu0 %v931_v0 }
 0x1d0   :  { %786 = vmatpush3.msra.mxu0 %v471_v6 }
 0x1d1   :  { %787 = vmatprep.subr.mxu0 %v931_v0 }
 0x1d2   :  { %788 = vmatpush3.msra.mxu0 %v470_v7 }
 0x1d3   :  { %789 = vmatprep.subr.mxu0 %v931_v0 }
 0x1d4   :  { %790 = vmatpush3.msra.mxu0 %v469_v8 }
 0x1d5   :  { %791 = vmatprep.subr.mxu0 %v931_v0 }
 0x1d6   :  { %792 = vmatpush3.msra.mxu0 %v468_v9 }
 0x1d7   :  { %793 = vmatprep.subr.mxu0 %v931_v0 }
 0x1d8   :  { %794 = vmatpush3.msra.mxu0 %v467_v10 }
 0x1d9   :  { %795 = vmatprep.subr.mxu0 %v931_v0 }
 0x1da   :  { %796 = vmatpush3.msra.mxu0 %v466_v16 }
 0x1db   :  { %797 = vmatprep.subr.mxu0 %v931_v0 }
 0x1dc   :  { %798 = vmatpush3.msra.mxu0 %v465_v17 }
 0x1dd   :  { %799 = vmatprep.subr.mxu0 %v931_v0 }
 0x1de   :  { %800 = vmatpush3.msra.mxu0 %v464_v18 }
 0x27f   :  { %v365_v12 = vpop.f32.mrf.mxu0 }
 0x280   :  { %v366_v13 = vadd.f32 %v585_v11, %v365_v12 }
 0x281   :  { %v733_v14 = vpop.f32.mrf.mxu0 }
 0x282   :  { %v369_v15 = vmax.f32 %v366_v13, 0.0 }
 0x284   :  { %767 = vmatmul.mubr.f32.vlgmr.msra.gmra.mxu1 %v369_v15 }
 0x344   :  { %v459_v20 = vpop.f32.mrf.mxu1 }
 0x345   :  { %v460_v21 = vadd.f32 %v586_v19, %v459_v20 }
 0x346   :  { %v768_v22 = vpop.f32.mrf.mxu1 }
 0x347   :  { %v463_v23 = vmax.f32 %v460_v21, 0.0 }
 0x349   :  { %802 = vmatmul.mubr.f32.vlgmr.msra.gmra.mxu0 %v463_v23 }
 0x409   :  { %v553_v25 = vpop.f32.mrf.mxu0 }
 0x40a   :  { %v554_v26 = vadd.f32 %v587_v24, %v553_v25 }
 0x40b   :  { %v803_v27 = vpop.f32.mrf.mxu0 }
 0x40c   :  { %v588_v28 = vmul.f32 -1.442695, %v554_v26 }
 0x40e   :  { %813 = vpow2.f32 %v588_v28 }
 0x41b   :  { %v814_v0 = vpop.eup %813 }
 0x41c   :  { %v560_v29 = vadd.f32 1.0, %v814_v0 }
 0x41e   :  { %815 = vrcp.f32 %v560_v29 }
 0x42b   :  { %v816_v30 = vpop.eup %815 }
 0x42c   :  { %563 = vst [vmem:[#allocation10] sm:$0xff] %v816_v30 }
 0x42d   :  { %908 = shalt.err (!%p905_p10)
}
 0x42e   :  { %573 = dma.vmem_to_hbm [thread:$0]  %s571_s26, 128, %s1128_s11, [#allocation4]  }
 0x42f   :  { %923 = dma.done.wait [#allocation4], 128  }
 0x430   :  { %924 = vsyncadd [#allocation4], 4294967168 }
 0x431   :  { %577 = vsyncpa [#allocation3], 1 }
 0x432   :  { %578 = vsyncpa [#allocation6], 1 }
 0x433   :  { %579 = vsyncpa [#allocation9], 1 }
 0x434   :  { %580 = vsyncpa [#allocation4], 1 }

</bundles_post_ra>
